<compile_context>
chip_gen: v6e
topology: v6e:2x2x1
jax: 0.10.0
libtpu: 0.0.40
codegen_flags: <defaults>
</compile_context>

<pallas_src>
import jax
import jax.numpy as jnp
from jax.experimental import pallas as pl
from jax.experimental.pallas import tpu as pltpu

_LANE = 128


def _lf_kernel(gamma_ref, a_ref, b_ref, o_ref):
    # gamma_ref lives in SMEM as a (1, 1) float32 scalar.
    g = gamma_ref[0, 0]
    a = a_ref[...].astype(jnp.float32)
    b = b_ref[...].astype(jnp.float32)
    o_ref[...] = (a + g * b).astype(o_ref.dtype)


def _lf_pallas_2d(a2, b2, gamma_f32):
    """a2, b2: (rows, 128) slabs. gamma_f32: (1, 1) float32."""
    rows, lane = a2.shape
    assert lane == _LANE
    itemsize = jnp.dtype(a2.dtype).itemsize

    # dtype-aware sublane multiple: 8 (f32), 16 (bf16/f16), 32 (int8/fp8).
    sub = 8 * max(1, 4 // itemsize)

    # ~2 MiB per input block: >=85% of HBM roofline, fits every generation's
    # default scoped-VMEM budget with double buffering (3 arrays x 2 bufs).
    target_rows = max(sub, ((2 << 20) // (_LANE * itemsize)) // sub * sub)

    if rows < 2 * sub:
        # Tiny slab: one full-array block (block_shape == array dims is allowed
        # even when not (sub, 128)-aligned).
        tile_r = rows
    else:
        # Aim for at least 2 grid steps so both v7x TensorCores get a shard.
        half = -(-rows // 2)
        half = -(-half // sub) * sub
        tile_r = min(target_rows, half)

    grid = (pl.cdiv(rows, tile_r),)

    return pl.pallas_call(
        _lf_kernel,
        out_shape=jax.ShapeDtypeStruct((rows, _LANE), a2.dtype),
        grid_spec=pl.GridSpec(
            grid=grid,
            in_specs=[
                pl.BlockSpec(memory_space=pltpu.SMEM),              # gamma scalar
                pl.BlockSpec((tile_r, _LANE), lambda i: (i, 0)),    # a tile
                pl.BlockSpec((tile_r, _LANE), lambda i: (i, 0)),    # b tile
            ],
            out_specs=pl.BlockSpec((tile_r, _LANE), lambda i: (i, 0)),
        ),
        compiler_params=pltpu.CompilerParams(
            dimension_semantics=("parallel",),
        ),
        cost_estimate=pl.CostEstimate(
            flops=2 * rows * _LANE,
            transcendentals=0,
            bytes_accessed=3 * rows * _LANE * itemsize,
        ),
    )(gamma_f32, a2, b2)


def lf_forward(a, b, gamma):
    """Computes a + gamma * b with a Pallas TPU kernel.

    a, b: equal-shaped float arrays (any shape). gamma: (1,)-shaped parameter.
    """
    assert a.shape == b.shape and a.dtype == b.dtype
    orig_shape = a.shape
    n = a.size

    gamma_f32 = jnp.asarray(gamma, jnp.float32).reshape(1, 1)

    rows_main = n // _LANE
    rem = n - rows_main * _LANE

    if rows_main == 0:
        # < 128 elements: not worth a kernel launch.
        return a + gamma_f32[0, 0].astype(a.dtype) * b

    a_flat = a.reshape(-1)
    b_flat = b.reshape(-1)

    if rem == 0:
        # Contiguous reshape only — no pad, no copies.
        a2 = a_flat.reshape(rows_main, _LANE)
        b2 = b_flat.reshape(rows_main, _LANE)
        out2 = _lf_pallas_2d(a2, b2, gamma_f32)
        return out2.reshape(orig_shape)

    # Rare ragged case: run the kernel on the 128-aligned main body and compute
    # only the tiny (<128 elem) tail in plain JAX (no whole-tensor pad/slice).
    main_n = rows_main * _LANE
    a2 = a_flat[:main_n].reshape(rows_main, _LANE)
    b2 = b_flat[:main_n].reshape(rows_main, _LANE)
    out_main = _lf_pallas_2d(a2, b2, gamma_f32)
    out_tail = a_flat[main_n:] + gamma_f32[0, 0].astype(a.dtype) * b_flat[main_n:]
    return jnp.concatenate([out_main.reshape(-1), out_tail]).reshape(orig_shape)


if __name__ == "__main__":
    key = jax.random.PRNGKey(0)
    k_a, k_b = jax.random.split(key)

    # Small NCHW-style inputs consistent with the module (elementwise, any shape).
    B, C, H, W = 2, 4, 16, 16
    a = jax.random.normal(k_a, (B, C, H, W), dtype=jnp.float32)
    b = jax.random.normal(k_b, (B, C, H, W), dtype=jnp.float32)

    # Deterministic parameter init, matching nn.Parameter(torch.zeros(1) + 0.5).
    gamma = jnp.zeros((1,), dtype=jnp.float32) + 0.5

    out = lf_forward(a, b, gamma)
    out = jax.block_until_ready(out)

    # Reference check in plain JAX.
    ref = a + gamma[0] * b
    assert out.shape == ref.shape
    assert jnp.allclose(out, ref, atol=1e-6, rtol=1e-6)

    print("KERNEL_OK")
</pallas_src>

<mosaic_0001>
module attributes {stable_mosaic.version = 11 : i64} {
  func.func @_lf_kernel(%arg0: i32, %arg1: memref<1x1xf32, #tpu.memory_space<smem>>, %arg2: memref<8x128xf32, #tpu.memory_space<vmem>>, %arg3: memref<8x128xf32, #tpu.memory_space<vmem>>, %arg4: memref<8x128xf32, #tpu.memory_space<vmem>>) attributes {dimension_semantics = [#tpu.dimension_semantics<parallel>], iteration_bounds = array<i64: 2>, scalar_prefetch = 0 : i64, scratch_operands = 0 : i64, tpu.core_type = #tpu.core_type<tc>, window_params = [{transform_indices = @transform_0, window_bounds = array<i64: 1, 1>}, {transform_indices = @transform_1, window_bounds = array<i64: 8, 128>}, {transform_indices = @transform_2, window_bounds = array<i64: 8, 128>}, {transform_indices = @transform_3, window_bounds = array<i64: 8, 128>}]} {
    %c0 = arith.constant 0 : index
    %c0_0 = arith.constant 0 : index
    %0 = memref.load %arg1[%c0, %c0_0] : memref<1x1xf32, #tpu.memory_space<smem>>
    %c0_1 = arith.constant 0 : index
    %c0_2 = arith.constant 0 : index
    %1 = vector.load %arg2[%c0_1, %c0_2] : memref<8x128xf32, #tpu.memory_space<vmem>>, vector<8x128xf32>
    %c0_3 = arith.constant 0 : index
    %c0_4 = arith.constant 0 : index
    %2 = vector.load %arg3[%c0_3, %c0_4] : memref<8x128xf32, #tpu.memory_space<vmem>>, vector<8x128xf32>
    %3 = vector.broadcast %0 : f32 to vector<8x128xf32>
    %4 = arith.mulf %3, %2 : vector<8x128xf32>
    %5 = arith.addf %1, %4 : vector<8x128xf32>
    %c0_5 = arith.constant 0 : index
    %c0_6 = arith.constant 0 : index
    %6 = vector.load %arg4[%c0_5, %c0_6] : memref<8x128xf32, #tpu.memory_space<vmem>>, vector<8x128xf32>
    tpu.vector_store %arg4[%c0_5, %c0_6], %5 {strides = array<i32>} : memref<8x128xf32, #tpu.memory_space<vmem>>, vector<8x128xf32>,
    return
  }
  func.func @transform_0(%arg0: i32) -> (i32, i32) {
    %c0_i32 = arith.constant 0 : i32
    %c0_i32_0 = arith.constant 0 : i32
    %c0_i32_1 = arith.constant 0 : i32
    return %c0_i32, %c0_i32_0 : i32, i32
  }
  func.func @transform_1(%arg0: i32) -> (i32, i32) {
    %c0_i32 = arith.constant 0 : i32
    %c0_i32_0 = arith.constant 0 : i32
    return %arg0, %c0_i32 : i32, i32
  }
  func.func @transform_2(%arg0: i32) -> (i32, i32) {
    %c0_i32 = arith.constant 0 : i32
    %c0_i32_0 = arith.constant 0 : i32
    return %arg0, %c0_i32 : i32, i32
  }
  func.func @transform_3(%arg0: i32) -> (i32, i32) {
    %c0_i32 = arith.constant 0 : i32
    %c0_i32_0 = arith.constant 0 : i32
    return %arg0, %c0_i32 : i32, i32
  }
}

</mosaic_0001>

<bundles_post_ra>
// kernel: tpu_custom_call.1
= control target key start
LH: loop header
LB: loop body
LE: loop exit
PB: predicated region body
PF: predicated region fallthrough
CT: control target
= control target key end

     0   :  { %s750_s0 = inlined_call_operand.<no memory space> [shape: f32[1,1], index: 0, kind: input, shape index: {}]   ;;  %s751_s1 = inlined_call_operand.hbm [shape: f32[16,128], index: 1, kind: input, shape index: {}]   ;;  %s752_s2 = inlined_call_operand.hbm [shape: f32[16,128], index: 2, kind: input, shape index: {}]   ;;  %s753_s3 = inlined_call_operand.hbm [shape: f32[16,128], index: 3, kind: output, shape index: {}]  }
   0x1   :  { %8 = sst [smem:[#allocation2]] %s750_s0 }
   0x2   :  { %9 = vsyncpa [#allocation4], 0 }
   0x3   :  { %11 = vsyncpa [#allocation4 + $0x1], 0 }
   0x4   :  { %12 = vsyncpa [#allocation7], 0 }
   0x5   :  { %14 = vsyncpa [#allocation7 + $0x1], 0 }
   0x6   :  { %15 = vsyncpa [#allocation5], 0 }
   0x7   :  { %17 = vsyncpa [#allocation5 + $0x1], 0  ;;  %s556_s14 = smov 0   ;;  %s558_s15 = smov 0  }
   0x8   :  { %s560_s16 = smov 0   ;;  %s562_s17 = smov 0  }
   0x9 LB: > { %s577_s0 = sadd.s32 4294967295, %s528_s17   ;;  %s338_s18 = sadd.s32 4294967294, %s528_s17   ;;  %s528_s17 = sphi %s562_s17, %s772_s17   ;;  %s524_s16 = sphi %s560_s16, %s771_s16   ;;  %s520_s15 = sphi %s558_s15, %s770_s15   ;;  %s516_s14 = sphi %s556_s14, %s769_s14  }
   0xa   : > { %s581_s19 = sadd.s32 1, %s528_s17   ;;  %s51_s20 = sadd.s32 1, %s524_s16 }
   0xb   : > { %s48_s21 = ssub.s32 %s528_s17, %s581_s19  ;;  %p58_p0 = scmp.ne.s32.totalorder %s524_s16, %s520_s15 }
   0xc   : > { %p49_p1 = scmp.eq.s32.totalorder %s48_s21, 0  ;;  %p59_p2 = scmp.eq.s32.totalorder %s528_s17, 0 }
   0xd   : > { %p64_p3 = scmp.ne.s32.totalorder %s520_s15, %s516_s14  ;;  %p65_p4 = scmp.eq.s32.totalorder %s577_s0, 0 }
   0xe   : > { %s593_s22 = scalar_select %p49_p1, %s524_s16, %s51_s20  }
   0xf   : > { %p595_p5 = por %p59_p2, %p58_p0  ;;  %p599_p6 = por %p65_p4, %p64_p3 }
  0x10   : > { %p114_p7 = scmp.eq.s32.totalorder %s577_s0, 1  ;;  %p120_p8 = scmp.eq.s32.totalorder %s338_s18, 1 }
  0x11   : > { %s757_s24 = scalar_select %p599_p6, 1, 0 }
  0x12   : > { %p370_p10 = scmp.lt.s32.totalorder %s528_s17, 2  ;;  %p606_p11 = por %p114_p7, %p58_p0 }
  0x13   : > { %p610_p12 = por %p120_p8, %p64_p3  ;;  %s615_s27 = sand.u32 1, %s524_s16  }
  0x14   : > { %s758_s25 = scalar_select %p606_p11, 1, 0 }
  0x15   : > { %s759_s26 = scalar_select %p610_p12, 1, 0 }
  0x16   : > { %s342_s28 = sshll.u32 %s528_s17, 7  ;;  %s341_s29 = sshll.u32 %s615_s27, 3 }
  0x17   : > { %s624_s5 = scalar_lea.hbm %s751_s1, %s342_s28  ;;  %s147_s6 = scalar_lea.vmem [#allocation3], %s341_s29 }
  0x18   : > { %s154_s7 = sshll.u32 %s147_s6, 4  ;;  %p630_p13 = pnand %p370_p10, %p595_p5  ;;  %s634_s7 = int_to_ptr.vmem [resolvable:$true] %s154_s7 }
  0x19   : > { %s144_s9 = scalar_lea.sflag [#allocation4], %s615_s27  ;;  %s404_s10 = scalar_lea.hbm %s624_s5, 128 }
  0x1a   : > { %p405_p2 = scmp.ne.s32.totalorder %s624_s5, %s404_s10  ;;  %p406_p3 = pneg %p630_p13 }
  0x1b   : > { %s409_s13 = scalar_lea.hbm %s751_s1, 256  ;;  %p410_p5 = scmp.lt.s32.totalorder %s624_s5, %s751_s1 }
  0x1c   : > { %p407_p4 = pnand %p406_p3, %p405_p2  ;;  %p411_p8 = scmp.lt.s32.totalorder %s409_s13, %s404_s10 }
  0x1e   : > { %p408_p7 = pneg %p407_p4  ;;  %p412_p10 = por %p411_p8, %p410_p5 }
  0x20   : > { %p413_p9 = pnand %p412_p10, %p408_p7 }
  0x22   : > { %416 = shalt.err (!%p413_p9)
}
  0x23   : > { %s417_s21 = scalar_lea.vmem %s634_s7, 128  ;;  %s530_s23 = smov [#allocation3]  }
  0x24   : > { %p418_p0 = scmp.ne.s32.totalorder %s634_s7, %s417_s21  ;;  %s422_s30 = sshll.u32 %s530_s23, 4  ;;  %s423_s30 = int_to_ptr.vmem [resolvable:$false] %s422_s30 }
  0x25   : > { %s424_s4 = scalar_lea.vmem %s423_s30, 256  ;;  %p425_p1 = scmp.lt.s32.totalorder %s634_s7, %s423_s30 }
  0x26   : > { %p420_p2 = pnand %p418_p0, %p406_p3  ;;  %p426_p12 = scmp.lt.s32.totalorder %s424_s4, %s417_s21 }
  0x28   : > { %p421_p4 = pneg %p420_p2  ;;  %p427_p11 = por %p426_p12, %p425_p1 }
  0x2a   : > { %p428_p5 = pnand %p427_p11, %p421_p4 }
  0x2c   : > { %431 = shalt.err (!%p428_p5)
}
  0x2d   : > { %362 = dma.hbm_to_vmem [thread:$0]  (!%p630_p13), %s624_s5, 128, %s634_s7, %s144_s9  }
  0x2e   : > { %p761_p9 = scmp.lt.s32.totalorder %s528_s17, 3  ;;  %p762_p0 = scmp.ge.s32.totalorder %s528_s17, 1 }
  0x2f   : > { %s676_s12 = scalar_lea.hbm %s752_s2, %s342_s28  ;;  %s165_s13 = scalar_lea.vmem [#allocation6], %s341_s29 }
  0x30   : > { %p667_p7 = pnand %p762_p0, %p761_p9  ;;  %s172_s18 = sshll.u32 %s165_s13, 4  ;;  %s173_s18 = int_to_ptr.vmem [resolvable:$true] %s172_s18 }
  0x31   : > { %s162_s5 = scalar_lea.sflag [#allocation7], %s615_s27  ;;  %s432_s7 = scalar_lea.hbm %s676_s12, 128 }
  0x32   : > { %s763_s6 = scalar_select %p667_p7, 1, 0 }
  0x33   : > { %p433_p11 = scmp.ne.s32.totalorder %s676_s12, %s432_s7  ;;  %s437_s21 = scalar_lea.hbm %s752_s2, 256 }
  0x34   : > { %p438_p8 = scmp.lt.s32.totalorder %s676_s12, %s752_s2  ;;  %p439_p10 = scmp.lt.s32.totalorder %s437_s21, %s432_s7 }
  0x35   : > { %p435_p12 = pnand %p433_p11, %p406_p3 }
  0x36   : > { %p440_p2 = por %p439_p10, %p438_p8 }
  0x37   : > { %p436_p1 = pneg %p435_p12 }
  0x39   : > { %p441_p4 = pnand %p440_p2, %p436_p1 }
  0x3b   : > { %444 = shalt.err (!%p441_p4)
}
  0x3c   : > { %s445_s29 = scalar_lea.vmem %s173_s18, 128  ;;  %s531_s27 = smov [#allocation6]  }
  0x3d   : > { %p446_p5 = scmp.ne.s32.totalorder %s173_s18, %s445_s29  ;;  %s450_s30 = sshll.u32 %s531_s27, 4  ;;  %s451_s30 = int_to_ptr.vmem [resolvable:$false] %s450_s30 }
  0x3e   : > { %s452_s4 = scalar_lea.vmem %s451_s30, 256  ;;  %p453_p11 = scmp.lt.s32.totalorder %s173_s18, %s451_s30 }
  0x3f   : > { %p448_p9 = pnand %p446_p5, %p406_p3  ;;  %p454_p12 = scmp.lt.s32.totalorder %s452_s4, %s445_s29 }
  0x41   : > { %p449_p0 = pneg %p448_p9  ;;  %p455_p6 = por %p454_p12, %p453_p11 }
  0x43   : > { %p456_p7 = pnand %p455_p6, %p449_p0 }
  0x45   : > { %459 = shalt.err (!%p456_p7)
}
  0x46   : > { %365 = dma.hbm_to_vmem [thread:$0]  (!%p630_p13), %s676_s12, 128, %s173_s18, %s162_s5  }
  0x47   : > { %p764_p1 = scmp.ne.s32.totalorder %s763_s6, 0 }
  0x48   : > { %s702_s10 = sand.u32 (!%p764_p1), 1, %s520_s15   ;;  %p765_p3 = scmp.ne.s32.totalorder (!%p764_p1), %s757_s24, 0 }
  0x49   : > { %181 = sbr.rel (%p764_p1) target bundleno = 106 (0x6a), region = 32  ;;  %s346_s11 = sshll.u32 (!%p764_p1), %s702_s10, 3 }
  0x4a   : > { %s184_s13 = scalar_lea.sflag (!%p764_p1), [#allocation4], %s702_s10  ;;  %s187_s7 = scalar_lea.vmem (!%p764_p1), [#allocation3], %s346_s11 }
  0x4e   : > { %503 = dma.done.wait (%p765_p3), %s184_s13, 128  }
  0x4f   : > { %505 = vsyncadd (%p765_p3), %s184_s13, 4294967168  ;;  %s193_s8 = scalar_lea.sflag [#allocation7], %s702_s10  ;;  %s196_s12 = scalar_lea.vmem [#allocation6], %s346_s11 }
  0x50   : > { %507 = dma.done.wait (%p765_p3), %s193_s8, 128  }
  0x51   : > { %509 = vsyncadd (%p765_p3), %s193_s8, 4294967168  ;;  %s224_s6 = sld [smem:[#allocation2]]  ;;  %v225_v0 = vld [vmem:[%s187_s7] sm:$0xff]  ;;  %v226_v1 = vld [vmem:[%s196_s12] sm:$0xff]  ;;  %s223_s18 = scalar_lea.vmem [#allocation8], %s346_s11 }
  0x52   : > { %s245_s5 = sshll.u32 %s223_s18, 4  ;;  %s350_s9 = sshll.u32 %s577_s0, 7  ;;  %s246_s5 = int_to_ptr.vmem [resolvable:$true] %s245_s5 }
  0x53   : > { %s243_s28 = scalar_lea.hbm %s753_s3, %s350_s9  ;;  %s232_s24 = scalar_lea.sflag [#allocation5], %s702_s10 }
  0x54   : > { %s460_s23 = scalar_lea.vmem %s246_s5, 128  ;;  %p766_p13 = scmp.ne.s32.totalorder %s758_s25, 0 }
  0x55   : > { %p461_p6 = scmp.ne.s32.totalorder %s246_s5, %s460_s23  ;;  %s532_s29 = smov [#allocation8]  }
  0x56   : > { %s464_s27 = sshll.u32 %s532_s29, 4  ;;  %s465_s27 = int_to_ptr.vmem [resolvable:$false] %s464_s27 }
  0x57   : > { %v227_v2 = vstv %s224_s6  ;;  %p462_p7 = pnand %p461_p6, %p766_p13  ;;  %s466_s30 = scalar_lea.vmem %s465_s27, 256 }
  0x58   : > { %v228_v3 = vmul.f32 %v227_v2, %v226_v1  ;;  %p467_p10 = scmp.lt.s32.totalorder %s246_s5, %s465_s27  ;;  %p468_p2 = scmp.lt.s32.totalorder %s466_s30, %s460_s23 }
  0x59   : > { %p463_p8 = pneg %p462_p7 }
  0x5a   : > { %v229_v4 = vadd.f32 %v228_v3, %v225_v0  ;;  %p469_p4 = por %p468_p2, %p467_p10 }
  0x5c   : > { %230 = vst [vmem:[%s223_s18] sm:$0xff] %v229_v4  ;;  %p470_p5 = pnand %p469_p4, %p463_p8 }
  0x5e   : > { %473 = shalt.err (!%p470_p5)
}
  0x5f   : > { %s474_s0 = scalar_lea.hbm %s243_s28, 128  ;;  %s478_s11 = scalar_lea.hbm %s753_s3, 256 }
  0x60   : > { %p475_p9 = scmp.ne.s32.totalorder %s243_s28, %s474_s0  ;;  %p479_p12 = scmp.lt.s32.totalorder %s243_s28, %s753_s3 }
  0x61   : > { %p480_p1 = scmp.lt.s32.totalorder %s478_s11, %s474_s0 }
  0x62   : > { %p476_p0 = pnand %p475_p9, %p766_p13 }
  0x63   : > { %p481_p3 = por %p480_p1, %p479_p12 }
  0x64   : > { %p477_p11 = pneg %p476_p0 }
  0x66   : > { %p482_p6 = pnand %p481_p3, %p477_p11 }
  0x68   : > { %485 = shalt.err (!%p482_p6)
}
  0x69   : > { %357 = dma.vmem_to_hbm [thread:$0]  (%p766_p13), %s246_s5, 128, %s243_s28, %s232_s24  }
  0x6a PF: > { %s257_s8 = sand.u32 1, %s516_s14   ;;  %p767_p7 = scmp.ne.s32.totalorder %s759_s26, 0 }
  0x6b   : > { %p768_p8 = scmp.ge.s32.totalorder %s528_s17, 2  ;;  %s258_s12 = scalar_lea.sflag [#allocation5], %s257_s8 }
  0x6d   : > { %p367_p10 = pnand %p768_p8, %p767_p7 }
  0x6f   : > { %p368_p2 = pneg %p367_p10 }
  0x71   : > { %511 = dma.done.wait (%p368_p2), %s258_s12, 128  }
  0x72   : > { %513 = vsyncadd (%p368_p2), %s258_s12, 4294967168  ;;  %p20_p4 = scmp.ge.s32.totalorder %s581_s19, 4   ;;  %s769_s14 = smov %s520_s15 }
  0x73   : > { %s770_s15 = smov %s524_s16  ;;  %s771_s16 = smov %s593_s22 }
  0x74   : > { %s772_s17 = smov %s581_s19  ;;  %22 = sbr.rel (!%p20_p4) target bundleno = 9 (0x9), region = 90 }
  0x79   :  { %263 = vsyncpa [#allocation4], 1 }
  0x7a   :  { %265 = vsyncpa [#allocation4 + $0x1], 1 }
  0x7b   :  { %266 = vsyncpa [#allocation7], 1 }
  0x7c   :  { %268 = vsyncpa [#allocation7 + $0x1], 1 }
  0x7d   :  { %269 = vsyncpa [#allocation5], 1 }
  0x7e   :  { %271 = vsyncpa [#allocation5 + $0x1], 1 }

</bundles_post_ra>
